<compile_context>
chip_gen: v6e
topology: v6e:2x2x1
jax: 0.10.0
libtpu: 0.0.40
codegen_flags: <defaults>
</compile_context>

<pallas_src>
import functools

import jax
import jax.numpy as jnp
from jax.experimental import pallas as pl
from jax.experimental.pallas import tpu as pltpu


# ----------------------------- kernels --------------------------------------

def _proj_kernel(x_ref, w_ref, b_ref, y_ref):
    """Row-tiled fused projection: Y = X @ W_aug + b_aug.

    The first OH columns of Y are the head-major projected features zc; the
    trailing 2H columns are the per-head attention scores e_l and e_r (folded
    into the weights in the wrapper), so this is a single MXU call per tile.
    """
    y_ref[...] = (jnp.dot(x_ref[...], w_ref[...],
                          preferred_element_type=jnp.float32) + b_ref[...])


def _gat_attn_kernel(el_ref, ert_ref, adj_ref, zc_ref, o_ref, *,
                     num_heads, out_size):
    """Masked per-head row softmax + SpMM for one row tile (single pass: the
    full column range is resident, so no online-softmax carry is needed).

    el_ref  : (TQ, H)   left scores of the row tile
    ert_ref : (H, N)    right scores of all nodes (pre-transposed, tiny)
    adj_ref : (TQ, N)   int8 adjacency mask rows (A + I)
    zc_ref  : (N, OH)   head-major projected features of all nodes
    o_ref   : (TQ, OH)  output slab (dense HBM writeback via out_spec)
    """
    # int8 mask compared in-register; no cast to f32.
    mask = adj_ref[...] != 0                                      # (TQ, N)
    neg = jnp.float32(-1e30)

    for h in range(num_heads):
        # Per-head slices are re-read from VMEM refs inside the loop so only
        # one head's (TQ, N) working set (e, a, p) is live at a time.
        e = el_ref[:, h:h + 1] + ert_ref[h:h + 1, :]              # (TQ, N)
        a = jnp.maximum(e, 0.01 * e)                              # leaky_relu
        a = jnp.where(mask, a, neg)
        m = jnp.max(a, axis=-1, keepdims=True)                    # (TQ, 1)
        # The where(mask, ..., 0) is load-bearing: it guarantees masked edges
        # contribute exactly 0 to the numerator and denominator.
        p = jnp.where(mask, jnp.exp(a - m), 0.0)                  # (TQ, N)
        inv_l = pl.reciprocal(jnp.sum(p, axis=-1, keepdims=True),
                              approx=True)                        # (TQ, 1) EUP
        zc_h = zc_ref[:, h * out_size:(h + 1) * out_size]         # (N, out)
        pv = jnp.dot(p, zc_h, preferred_element_type=jnp.float32)  # (TQ, out)
        o_ref[:, h * out_size:(h + 1) * out_size] = pv * inv_l
    # NOTE: the HBM writeback of this tile is still one dense (TQ, OH) DMA.


# ----------------------------- wrapper ---------------------------------------

def gat_conv_forward(Z, adj_i8, W, b, a_l, a_r, *, out_size, num_heads,
                     tm=128, tq=128):
    N, in_size = Z.shape
    H = num_heads
    OH = out_size * H
    tm = min(tm, N)
    tq = min(tq, N)
    assert N % tm == 0 and N % tq == 0

    # Head-major column permutation of the projection weights: permuted column
    # h*out + o equals original column o*H + h (PyTorch's .view(N, out, H)
    # layout), fusing the head relayout into the matmul for free.
    perm = (jnp.arange(out_size)[None, :] * H
            + jnp.arange(H)[:, None]).reshape(-1)
    wt_hm = W.T[:, perm]                                   # (in, OH)
    b_hm = b[perm]                                         # (OH,)

    # Block-structured score projections e_l = zc @ AL, e_r = zc @ AR, folded
    # into the projection weights: W_aug = [wt_hm | wt_hm@AL | wt_hm@AR].
    head_onehot = jnp.repeat(jnp.eye(H, dtype=jnp.float32), out_size, axis=0)
    al_flat = jnp.transpose(a_l[0], (1, 0)).reshape(OH)    # index h*out + o
    ar_flat = jnp.transpose(a_r[0], (1, 0)).reshape(OH)
    AL = al_flat[:, None] * head_onehot                    # (OH, H)
    AR = ar_flat[:, None] * head_onehot                    # (OH, H)
    w_aug = jnp.concatenate([wt_hm, wt_hm @ AL, wt_hm @ AR], axis=1)
    b_aug = jnp.concatenate([b_hm, b_hm @ AL, b_hm @ AR]).reshape(1, OH + 2 * H)

    # --- fused projection + score kernel (row tiled, megacore-parallel) ---
    y = pl.pallas_call(
        _proj_kernel,
        out_shape=jax.ShapeDtypeStruct((N, OH + 2 * H), jnp.float32),
        grid=(N // tm,),
        in_specs=[
            pl.BlockSpec((tm, in_size), lambda i: (i, 0)),
            pl.BlockSpec((in_size, OH + 2 * H), lambda i: (0, 0)),
            pl.BlockSpec((1, OH + 2 * H), lambda i: (0, 0)),
        ],
        out_specs=pl.BlockSpec((tm, OH + 2 * H), lambda i: (i, 0)),
        compiler_params=pltpu.CompilerParams(dimension_semantics=("parallel",)),
    )(Z, w_aug, b_aug)

    zc = y[:, :OH]                 # (N, OH) head-major projected features
    el = y[:, OH:OH + H]           # (N, H)  left scores
    ert = y[:, OH + H:].T          # (H, N)  right scores (tiny XLA transpose)

    # --- single-pass masked softmax + SpMM (one row tile per grid step) ---
    kernel = functools.partial(_gat_attn_kernel, num_heads=H, out_size=out_size)
    out_hm = pl.pallas_call(
        kernel,
        out_shape=jax.ShapeDtypeStruct((N, OH), jnp.float32),
        grid=(N // tq,),
        in_specs=[
            pl.BlockSpec((tq, H), lambda i: (i, 0)),
            pl.BlockSpec((H, N), lambda i: (0, 0)),
            pl.BlockSpec((tq, N), lambda i: (i, 0)),
            pl.BlockSpec((N, OH), lambda i: (0, 0)),
        ],
        out_specs=pl.BlockSpec((tq, OH), lambda i: (i, 0)),
        compiler_params=pltpu.CompilerParams(dimension_semantics=("parallel",)),
    )(el, ert, adj_i8, zc)

    # (N, H*out) -> (N, out, H); tiny feature-only transpose to match PyTorch.
    return out_hm.reshape(N, H, out_size).transpose(0, 2, 1)


# --------------------------- pure-JAX reference -------------------------------

def gat_conv_reference(Z, adj_mask, W, b, a_l, a_r, *, out_size, num_heads):
    N = Z.shape[0]
    zw = (Z @ W.T + b).reshape(N, out_size, num_heads)
    e_l = (zw * a_l).sum(axis=1)                                 # (N, H)
    e_r = (zw * a_r).sum(axis=1)                                 # (N, H)
    e = e_l[:, None, :] + e_r[None, :, :]                        # (N, N, H)
    a = jnp.where(e > 0, e, 0.01 * e)                            # leaky_relu
    mask = (adj_mask > 0)[:, :, None]
    a = jnp.where(mask, a, -1e30)
    p = jnp.where(mask, jnp.exp(a - a.max(axis=1, keepdims=True)), 0.0)
    attn = p / p.sum(axis=1, keepdims=True)
    return jnp.einsum("ijh,joh->ioh", attn, zw)


# ------------------------------- main -----------------------------------------

if __name__ == "__main__":
    N, in_size, out_size, num_heads = 256, 64, 8, 4

    key = jax.random.PRNGKey(0)
    k1, k2, k3, k4, k5, k6 = jax.random.split(key, 6)

    # A_hat = A + I: random ~10% sparsity pattern plus self loops, as int8 mask.
    adj = jax.random.uniform(k1, (N, N)) < 0.1
    adj_i8 = (adj | jnp.eye(N, dtype=bool)).astype(jnp.int8)

    Z = jax.random.normal(k2, (N, in_size), dtype=jnp.float32)

    # Deterministic xavier_normal-style init (gain for relu = sqrt(2)).
    gain = 2.0 ** 0.5
    std_w = gain * (2.0 / (in_size + out_size * num_heads)) ** 0.5
    W = std_w * jax.random.normal(k3, (out_size * num_heads, in_size),
                                  dtype=jnp.float32)
    b = 0.01 * jax.random.normal(k4, (out_size * num_heads,), dtype=jnp.float32)
    std_a = gain * (2.0 / (out_size * num_heads + num_heads)) ** 0.5
    a_l = std_a * jax.random.normal(k5, (1, out_size, num_heads), dtype=jnp.float32)
    a_r = std_a * jax.random.normal(k6, (1, out_size, num_heads), dtype=jnp.float32)

    out = gat_conv_forward(Z, adj_i8, W, b, a_l, a_r,
                           out_size=out_size, num_heads=num_heads)
    out = jax.block_until_ready(out)

    ref = gat_conv_reference(Z, adj_i8, W, b, a_l, a_r,
                             out_size=out_size, num_heads=num_heads)
    assert out.shape == (N, out_size, num_heads), out.shape
    assert jnp.allclose(out, ref, atol=1e-2, rtol=1e-2), "mismatch vs reference"

    print("KERNEL_OK")
</pallas_src>

<mosaic_0001>
module attributes {stable_mosaic.version = 11 : i64} {
  func.func @_proj_kernel(%arg0: i32, %arg1: memref<128x64xf32, #tpu.memory_space<vmem>>, %arg2: memref<64x40xf32, #tpu.memory_space<vmem>>, %arg3: memref<1x40xf32, #tpu.memory_space<vmem>>, %arg4: memref<128x40xf32, #tpu.memory_space<vmem>>) attributes {dimension_semantics = [#tpu.dimension_semantics<parallel>], iteration_bounds = array<i64: 2>, scalar_prefetch = 0 : i64, scratch_operands = 0 : i64, tpu.core_type = #tpu.core_type<tc>, window_params = [{transform_indices = @transform_0, window_bounds = array<i64: 128, 64>}, {pipeline_mode = #tpu.pipeline_mode<synchronous>, transform_indices = @transform_1, window_bounds = array<i64: 64, 40>}, {pipeline_mode = #tpu.pipeline_mode<synchronous>, transform_indices = @transform_2, window_bounds = array<i64: 1, 40>}, {transform_indices = @transform_3, window_bounds = array<i64: 128, 40>}]} {
    %c0 = arith.constant 0 : index
    %c0_0 = arith.constant 0 : index
    %0 = vector.load %arg1[%c0, %c0_0] : memref<128x64xf32, #tpu.memory_space<vmem>>, vector<128x64xf32>
    %c0_1 = arith.constant 0 : index
    %c0_2 = arith.constant 0 : index
    %1 = vector.load %arg2[%c0_1, %c0_2] : memref<64x40xf32, #tpu.memory_space<vmem>>, vector<64x40xf32>
    %cst = arith.constant dense<0.000000e+00> : vector<128x40xf32>
    %2 = tpu.matmul %0, %1, %cst {dimension_numbers = #tpu.dot_dimension_numbers<[1], [0], [0], [1], [0, 0, 1, 1], [], []>} : vector<128x64xf32>, vector<64x40xf32>, vector<128x40xf32> -> vector<128x40xf32>
    %c0_3 = arith.constant 0 : index
    %c0_4 = arith.constant 0 : index
    %3 = vector.load %arg3[%c0_3, %c0_4] : memref<1x40xf32, #tpu.memory_space<vmem>>, vector<1x40xf32>
    %4 = vector.broadcast %3 : vector<1x40xf32> to vector<128x40xf32>
    %5 = arith.addf %2, %4 : vector<128x40xf32>
    %c0_5 = arith.constant 0 : index
    %c0_6 = arith.constant 0 : index
    %6 = vector.load %arg4[%c0_5, %c0_6] : memref<128x40xf32, #tpu.memory_space<vmem>>, vector<128x40xf32>
    tpu.vector_store %arg4[%c0_5, %c0_6], %5 {strides = array<i32>} : memref<128x40xf32, #tpu.memory_space<vmem>>, vector<128x40xf32>,
    return
  }
  func.func @transform_0(%arg0: i32) -> (i32, i32) {
    %c0_i32 = arith.constant 0 : i32
    %c0_i32_0 = arith.constant 0 : i32
    return %arg0, %c0_i32 : i32, i32
  }
  func.func @transform_1(%arg0: i32) -> (i32, i32) {
    %c0_i32 = arith.constant 0 : i32
    %c0_i32_0 = arith.constant 0 : i32
    %c0_i32_1 = arith.constant 0 : i32
    return %c0_i32, %c0_i32_0 : i32, i32
  }
  func.func @transform_2(%arg0: i32) -> (i32, i32) {
    %c0_i32 = arith.constant 0 : i32
    %c0_i32_0 = arith.constant 0 : i32
    %c0_i32_1 = arith.constant 0 : i32
    return %c0_i32, %c0_i32_0 : i32, i32
  }
  func.func @transform_3(%arg0: i32) -> (i32, i32) {
    %c0_i32 = arith.constant 0 : i32
    %c0_i32_0 = arith.constant 0 : i32
    return %arg0, %c0_i32 : i32, i32
  }
}

</mosaic_0001>

<bundles_post_ra>
// kernel: tpu_custom_call.1
= control target key start
LH: loop header
LB: loop body
LE: loop exit
PB: predicated region body
PF: predicated region fallthrough
CT: control target
= control target key end

     0   :  { %s616_s12 = smov 0   ;;  %s735_s0 = inlined_call_operand.vmem [shape: f32[256,64], index: 0, kind: input, shape index: {}]   ;;  %s736_s1 = inlined_call_operand.vmem [shape: f32[64,40], index: 1, kind: input, shape index: {}]   ;;  %s737_s2 = inlined_call_operand.vmem [shape: f32[1,40], index: 2, kind: input, shape index: {}]   ;;  %s738_s3 = inlined_call_operand.vmem [shape: f32[256,40], index: 3, kind: output, shape index: {}]  }
   0x1 LB: > { %s472_s13 = sadd.s32 4294967295, %s594_s12   ;;  %p476_p0 = scmp.ge.s32.totalorder %s594_s12, 1  ;;  %s594_s12 = sphi %s616_s12, %s13_s12  }
   0x2   : > { %p138_p1 = scmp.lt.s32.totalorder %s594_s12, 3 }
   0x4   : > { %p139_p2 = pnand %p476_p0, %p138_p1 }
   0x5   : > { %s477_s18 = sshll.u32 (!%p139_p2), %s472_s13, 4 }
   0x6   : > { %142 = sbr.rel (%p139_p2) target bundleno = 239 (0xef), region = 32  ;;  %p163_p3 = scmp.lt.s32.totalorder (!%p139_p2), %s477_s18, 31 }
   0xb   : > { %v197_v0 = vld [vmem:[%s736_s1 + $0x38] sm:$0xff]  ;;  %v196_v1 = vld [vmem:[%s736_s1 + $0x30] sm:$0xff]  ;;  %v195_v2 = vld [vmem:[%s736_s1 + $0x28] sm:$0xff]  ;;  %s740_s18 = smov (!%p163_p3, %s477_s18), 31  ;;  %vm205_vm0 = vcmask 523264   ;;  %vm399_vm1 = vcmask 326656  }
   0xc   : > { %524 = vmatprep.subr.mxu0 %v197_v0  ;;  %564 = vmatprep.subr.mxu1 %v197_v0  ;;  %v194_v3 = vld [vmem:[%s736_s1 + $0x20] sm:$0xff]  ;;  %v193_v4 = vld [vmem:[%s736_s1 + $0x18] sm:$0xff]  ;;  %v192_v5 = vld [vmem:[%s736_s1 + $0x10] sm:$0xff]  ;;  %s478_s27 = sshll.u32 %s740_s18, 3 }
   0xd   : > { %525 = vmatpush3.msra.mxu0 %v197_v0  ;;  %572 = vmatpush3.msra.mxu1 %v197_v0  ;;  %v191_v6 = vld [vmem:[%s736_s1 + $0x8] sm:$0xff]  ;;  %s653_s5 = scalar_lea.vmem %s735_s0, %s478_s27  ;;  %v190_v7 = vld [vmem:[%s736_s1] sm:$0xff]  ;;  %s698_s13 = scalar_lea.vmem %s738_s3, %s478_s27 }
   0xe   : > { %526 = vmatprep.subr.mxu0 %v196_v1  ;;  %565 = vmatprep.subr.mxu1 %v196_v1  ;;  %v174_v8 = vld [vmem:[%s653_s5] sm:$0xff]  ;;  %v175_v10 = vld [vmem:[%s653_s5 + $0x8] sm:$0xff]  ;;  %v176_v12 = vld [vmem:[%s653_s5 + $0x10] sm:$0xff] }
   0xf   : > { %527 = vmatpush3.msra.mxu0 %v196_v1  ;;  %573 = vmatpush3.msra.mxu1 %v196_v1  ;;  %v182_v9 = vld [vmem:[%s653_s5 + $0x40] sm:$0xff]  ;;  %v183_v11 = vld [vmem:[%s653_s5 + $0x48] sm:$0xff]  ;;  %v184_v13 = vld [vmem:[%s653_s5 + $0x50] sm:$0xff] }
  0x10   : > { %528 = vmatprep.subr.mxu0 %v195_v2  ;;  %566 = vmatprep.subr.mxu1 %v195_v2  ;;  %v177_v14 = vld [vmem:[%s653_s5 + $0x18] sm:$0xff]  ;;  %v178_v16 = vld [vmem:[%s653_s5 + $0x20] sm:$0xff]  ;;  %v179_v18 = vld [vmem:[%s653_s5 + $0x28] sm:$0xff] }
  0x11   : > { %529 = vmatpush3.msra.mxu0 %v195_v2  ;;  %574 = vmatpush3.msra.mxu1 %v195_v2  ;;  %v185_v15 = vld [vmem:[%s653_s5 + $0x58] sm:$0xff]  ;;  %v186_v17 = vld [vmem:[%s653_s5 + $0x60] sm:$0xff]  ;;  %v187_v19 = vld [vmem:[%s653_s5 + $0x68] sm:$0xff] }
  0x12   : > { %530 = vmatprep.subr.mxu0 %v194_v3  ;;  %567 = vmatprep.subr.mxu1 %v194_v3  ;;  %v180_v20 = vld [vmem:[%s653_s5 + $0x30] sm:$0xff]  ;;  %v181_v22 = vld [vmem:[%s653_s5 + $0x38] sm:$0xff]  ;;  %v481_v24 = vld [vmem:[%s737_s2] ss:$0 sm:$0xff] }
  0x13   : > { %531 = vmatpush3.msra.mxu0 %v194_v3  ;;  %575 = vmatpush3.msra.mxu1 %v194_v3  ;;  %v188_v21 = vld [vmem:[%s653_s5 + $0x70] sm:$0xff]  ;;  %v189_v23 = vld [vmem:[%s653_s5 + $0x78] sm:$0xff] }
  0x14   : > { %532 = vmatprep.subr.mxu0 %v193_v4  ;;  %568 = vmatprep.subr.mxu1 %v193_v4 }
  0x15   : > { %533 = vmatpush3.msra.mxu0 %v193_v4  ;;  %576 = vmatpush3.msra.mxu1 %v193_v4 }
  0x16   : > { %534 = vmatprep.subr.mxu0 %v192_v5  ;;  %569 = vmatprep.subr.mxu1 %v192_v5 }
  0x17   : > { %535 = vmatpush3.msra.mxu0 %v192_v5  ;;  %577 = vmatpush3.msra.mxu1 %v192_v5 }
  0x18   : > { %536 = vmatprep.subr.mxu0 %v191_v6  ;;  %570 = vmatprep.subr.mxu1 %v191_v6 }
  0x19   : > { %537 = vmatpush3.msra.mxu0 %v191_v6  ;;  %578 = vmatpush3.msra.mxu1 %v191_v6 }
  0x1a   : > { %538 = vmatprep.subr.mxu0 %v190_v7  ;;  %571 = vmatprep.subr.mxu1 %v190_v7 }
  0x1b   : > { %539 = vmatpush3.msra.mxu0 %v190_v7  ;;  %579 = vmatpush3.msra.mxu1 %v190_v7 }
  0x1c   : > { %540 = vmatprep.mubr.msk.f32.mxu0 %vm205_vm0, %v174_v8  ;;  %552 = vmatprep.mubr.msk.f32.mxu1 %vm205_vm0, %v182_v9 }
  0x1d   : > { %541 = vmatmul.mubr.msk.f32.vlgmr.msra.gmra.mxu0 %vm205_vm0, %v175_v10  ;;  %553 = vmatmul.mubr.msk.f32.vlgmr.msra.gmra.mxu1 %vm205_vm0, %v183_v11 }
  0x1e   : > { %543 = vmatprep.mubr.msk.f32.mxu0 %vm205_vm0, %v176_v12  ;;  %555 = vmatprep.mubr.msk.f32.mxu1 %vm205_vm0, %v184_v13 }
  0x21   : > { %544 = vmatmul.mubr.msk.f32.gmra.mxu0 %vm205_vm0, %v177_v14  ;;  %556 = vmatmul.mubr.msk.f32.gmra.mxu1 %vm205_vm0, %v185_v15 }
  0x22   : > { %546 = vmatprep.mubr.msk.f32.mxu0 %vm205_vm0, %v178_v16  ;;  %558 = vmatprep.mubr.msk.f32.mxu1 %vm205_vm0, %v186_v17 }
  0x25   : > { %547 = vmatmul.mubr.msk.f32.gmra.mxu0 %vm205_vm0, %v179_v18  ;;  %559 = vmatmul.mubr.msk.f32.gmra.mxu1 %vm205_vm0, %v187_v19 }
  0x26   : > { %549 = vmatprep.mubr.msk.f32.mxu0 %vm205_vm0, %v180_v20  ;;  %561 = vmatprep.mubr.msk.f32.mxu1 %vm205_vm0, %v188_v21 }
  0x29   : > { %550 = vmatmul.mubr.msk.f32.gmra.mxu0 %vm205_vm0, %v181_v22  ;;  %562 = vmatmul.mubr.msk.f32.gmra.mxu1 %vm205_vm0, %v189_v23 }
  0xdd   : > { %v542_v25 = vpop.f32.mrf.mxu0  ;;  %v554_v26 = vpop.f32.mrf.mxu1 }
  0xde   : > { %v326_v27 = vadd.f32 %v542_v25, %v481_v24  ;;  %v366_v28 = vadd.f32 %v554_v26, %v481_v24 }
  0xdf   : > { %v320_v29 = vpop.f32.mrf.mxu0  ;;  %v360_v30 = vpop.f32.mrf.mxu1 }
  0xe0   : > { %401 = vst.msk [vmem:[%s698_s13 + $0x8] sm:$0xff] %vm399_vm1, %v326_v27  ;;  %409 = vst.msk [vmem:[%s698_s13 + $0x48] sm:$0xff] %vm399_vm1, %v366_v28  ;;  %v321_v31 = vadd.f32 %v481_v24, %v320_v29  ;;  %v361_v32 = vadd.f32 %v481_v24, %v360_v30 }
  0xe1   : > { %v545_v33 = vpop.f32.mrf.mxu0  ;;  %v557_v34 = vpop.f32.mrf.mxu1 }
  0xe2   : > { %400 = vst.msk [vmem:[%s698_s13] sm:$0xff] %vm399_vm1, %v321_v31  ;;  %408 = vst.msk [vmem:[%s698_s13 + $0x40] sm:$0xff] %vm399_vm1, %v361_v32  ;;  %v336_v35 = vadd.f32 %v545_v33, %v481_v24  ;;  %v376_v36 = vadd.f32 %v557_v34, %v481_v24 }
  0xe3   : > { %v330_v37 = vpop.f32.mrf.mxu0  ;;  %v370_v38 = vpop.f32.mrf.mxu1 }
  0xe4   : > { %403 = vst.msk [vmem:[%s698_s13 + $0x18] sm:$0xff] %vm399_vm1, %v336_v35  ;;  %411 = vst.msk [vmem:[%s698_s13 + $0x58] sm:$0xff] %vm399_vm1, %v376_v36  ;;  %v331_v39 = vadd.f32 %v481_v24, %v330_v37  ;;  %v371_v40 = vadd.f32 %v481_v24, %v370_v38 }
  0xe5   : > { %v548_v41 = vpop.f32.mrf.mxu0  ;;  %v560_v42 = vpop.f32.mrf.mxu1 }
  0xe6   : > { %402 = vst.msk [vmem:[%s698_s13 + $0x10] sm:$0xff] %vm399_vm1, %v331_v39  ;;  %410 = vst.msk [vmem:[%s698_s13 + $0x50] sm:$0xff] %vm399_vm1, %v371_v40  ;;  %v346_v43 = vadd.f32 %v548_v41, %v481_v24  ;;  %v386_v44 = vadd.f32 %v560_v42, %v481_v24 }
  0xe7   : > { %v340_v45 = vpop.f32.mrf.mxu0  ;;  %v380_v46 = vpop.f32.mrf.mxu1 }
  0xe8   : > { %405 = vst.msk [vmem:[%s698_s13 + $0x28] sm:$0xff] %vm399_vm1, %v346_v43  ;;  %413 = vst.msk [vmem:[%s698_s13 + $0x68] sm:$0xff] %vm399_vm1, %v386_v44  ;;  %v341_v47 = vadd.f32 %v481_v24, %v340_v45  ;;  %v381_v48 = vadd.f32 %v481_v24, %v380_v46 }
  0xe9   : > { %v551_v49 = vpop.f32.mrf.mxu0  ;;  %v563_v50 = vpop.f32.mrf.mxu1 }
  0xea   : > { %404 = vst.msk [vmem:[%s698_s13 + $0x20] sm:$0xff] %vm399_vm1, %v341_v47  ;;  %412 = vst.msk [vmem:[%s698_s13 + $0x60] sm:$0xff] %vm399_vm1, %v381_v48  ;;  %v356_v51 = vadd.f32 %v551_v49, %v481_v24  ;;  %v396_v52 = vadd.f32 %v563_v50, %v481_v24 }
  0xeb   : > { %v350_v53 = vpop.f32.mrf.mxu0  ;;  %v390_v54 = vpop.f32.mrf.mxu1 }
  0xec   : > { %407 = vst.msk [vmem:[%s698_s13 + $0x38] sm:$0xff] %vm399_vm1, %v356_v51  ;;  %415 = vst.msk [vmem:[%s698_s13 + $0x78] sm:$0xff] %vm399_vm1, %v396_v52  ;;  %v351_v55 = vadd.f32 %v481_v24, %v350_v53  ;;  %v391_v56 = vadd.f32 %v481_v24, %v390_v54 }
  0xee   : > { %406 = vst.msk [vmem:[%s698_s13 + $0x30] sm:$0xff] %vm399_vm1, %v351_v55  ;;  %414 = vst.msk [vmem:[%s698_s13 + $0x70] sm:$0xff] %vm399_vm1, %v391_v56 }
  0xef PF: > { %s13_s12 = sadd.s32 1, %s594_s12  }
  0xf0   : > { %p10_p4 = scmp.ge.s32.totalorder %s13_s12, 4  }
  0xf2   :  { %12 = sbr.rel (!%p10_p4) target bundleno = 1 (0x1), region = 62 }

</bundles_post_ra>
